<compile_context>
chip_gen: v7x
topology: tpu7x:2x2x1
jax: 0.10.0
libtpu: 0.0.40
codegen_flags: <defaults>
</compile_context>

<pallas_src>
import jax
import jax.numpy as jnp
from jax.experimental import pallas as pl
from jax.experimental.pallas import tpu as pltpu


def _round_up(x: int, m: int) -> int:
    return ((x + m - 1) // m) * m


def _link_predictor_kernel(z_src_ref, z_dst_ref, w_cat_ref, b_hid_ref,
                           w_out_ref, b_out_ref, out_ref):
    cdt = w_cat_ref.dtype
    # Cast activations to the compute dtype in VMEM and fuse the two hidden
    # matmuls into one K = 2*dim_p contraction (single MXU pass).
    z = jnp.concatenate([z_src_ref[...].astype(cdt),
                         z_dst_ref[...].astype(cdt)], axis=-1)        # (tm, 2*dim_p)
    h = jnp.dot(z, w_cat_ref[...], preferred_element_type=jnp.float32)
    h = jnp.maximum(h + b_hid_ref[...], 0.0)                          # (tm, dim_p) f32

    # Output projection, lane-dense: (8, dim_p) @ (tm, dim_p)^T -> (8, tm).
    # NT contraction (flash-attention form, MXU-native); only row 0 of w_out is
    # real.  Done in f32 from the f32 hidden tile — tiny dot, better numerics.
    logits8 = jax.lax.dot_general(
        w_out_ref[...], h,
        dimension_numbers=(((1,), (1,)), ((), ())),
        preferred_element_type=jnp.float32)
    logits = logits8[0:1, :] + b_out_ref[...]                         # (1, tm)
    out_ref[...] = jax.nn.sigmoid(logits).astype(out_ref.dtype)


def link_predictor(z_src, z_dst, params, *, tm=None, compute_dtype=jnp.bfloat16):
    """params: w_src/b_src, w_dst/b_dst as (dim,dim)/(dim,), w_out (1,dim), b_out (1,)."""
    N, dim = z_src.shape
    assert z_dst.shape == (N, dim)

    f32 = jnp.float32
    dim_p = _round_up(dim, 128)                      # full lane width
    cbytes = jnp.dtype(compute_dtype).itemsize
    in_bytes = jnp.dtype(z_src.dtype).itemsize

    # ---- Row-tile selection (scales with feature width) ---------------------
    n128 = _round_up(N, 128)
    tm_eff = _round_up(min(max((2 << 20) // (dim_p * in_bytes), 128), 4096), 128)
    if tm is not None:
        tm_eff = min(tm_eff, _round_up(int(tm), 128))
    tm_eff = min(tm_eff, n128)
    if n128 >= 256:
        # Keep the grid >= 2 so both v7x TensorCores get work (no-op for big N).
        tm_eff = min(tm_eff, _round_up(pl.cdiv(n128, 2), 128))

    single_w = dim_p >= 512   # single-buffer big grid-invariant weights

    def vmem_est(t):
        return (2 * 2 * t * dim_p * in_bytes                         # z tiles, 2 streams x 2 bufs
                + t * 2 * dim_p * cbytes                             # in-kernel concat/cast buffer
                + t * dim_p * 4                                      # f32 hidden activations
                + (1 if single_w else 2) * 2 * dim_p * dim_p * cbytes  # stacked hidden weight
                + 2 * 8 * dim_p * 4                                  # w_out row (f32)
                + 2 * (dim_p + 1) * 4                                # biases
                + 8 * t * 4 + 2 * t * 4)                             # logits8 + out row

    while tm_eff > 128 and vmem_est(tm_eff) > (24 << 20):
        tm_eff = max(128, _round_up(tm_eff // 2, 128))
    # TODO(synk): for dim_p >= ~2048, tile the contraction (K) dimension with an
    # f32 accumulator scratch instead of keeping both full weight halves resident.

    grid = (pl.cdiv(N, tm_eff),)
    n_out = grid[0] * tm_eff

    # ---- Parameter prep (tiny, one-time) ------------------------------------
    def pad2(x, rows, cols):
        x = x.astype(f32)
        return jnp.pad(x, ((0, rows - x.shape[0]), (0, cols - x.shape[1])))

    # Activations streamed as-is; pad only the feature dim (must be zeros).
    if dim_p != dim:
        z_src_in = jnp.pad(z_src, ((0, 0), (0, dim_p - dim)))
        z_dst_in = jnp.pad(z_dst, ((0, 0), (0, dim_p - dim)))
    else:
        z_src_in, z_dst_in = z_src, z_dst

    # Stacked hidden weight [W_src^T ; W_dst^T], pre-transposed to [in, out].
    w_cat = jnp.concatenate(
        [pad2(params["w_src"].T, dim_p, dim_p),
         pad2(params["w_dst"].T, dim_p, dim_p)], axis=0).astype(compute_dtype)
    # Output weight as an 8-sublane f32 row (row 0 real, rest zeros).
    w_out = pad2(params["w_out"], 8, dim_p)
    # Fold the two hidden biases (saves a VPU add per tile); keep f32.
    b_hid = pad2((params["b_src"] + params["b_dst"]).reshape(1, dim), 1, dim_p)
    b_out = params["b_out"].astype(f32).reshape(1, 1)

    # ---- Specs ---------------------------------------------------------------
    row_spec = pl.BlockSpec((tm_eff, dim_p), lambda i: (i, 0))

    def const_spec(shape, big=False):
        kwargs = {}
        if big and single_w:
            kwargs["pipeline_mode"] = pl.Buffered(1)   # DMA'd once; save VMEM
        return pl.BlockSpec(shape, lambda i: (0, 0), **kwargs)

    vlimit = int(min(max(vmem_est(tm_eff) + (8 << 20), 16 << 20), 32 << 20))

    cost = pl.CostEstimate(
        flops=int(2 * n_out * (2 * dim_p) * dim_p      # hidden matmul
                  + 2 * n_out * dim_p * 8              # output projection
                  + 4 * n_out * dim_p),                # bias + relu + epilogue
        transcendentals=int(n_out),
        bytes_accessed=int(2 * N * dim_p * in_bytes
                           + 2 * dim_p * dim_p * cbytes
                           + 8 * dim_p * 4 + (dim_p + 1) * 4
                           + n_out * 4),
    )

    out_row = pl.pallas_call(
        _link_predictor_kernel,
        out_shape=jax.ShapeDtypeStruct((1, n_out), jnp.float32),
        grid_spec=pltpu.PrefetchScalarGridSpec(
            num_scalar_prefetch=0,
            grid=grid,
            in_specs=[
                row_spec,                                  # z_src tile (tm, dim_p), f32
                row_spec,                                  # z_dst tile (tm, dim_p), f32
                const_spec((2 * dim_p, dim_p), big=True),  # [W_src^T ; W_dst^T]
                const_spec((1, dim_p)),                    # folded hidden bias (f32)
                const_spec((8, dim_p), big=True),          # W_out row (f32, 8 sublanes)
                const_spec((1, 1)),                        # b_out (f32)
            ],
            out_specs=pl.BlockSpec((1, tm_eff), lambda i: (0, i)),   # lane-dense row
        ),
        compiler_params=pltpu.CompilerParams(
            dimension_semantics=("parallel",),
            vmem_limit_bytes=vlimit),
        cost_estimate=cost,
    )(z_src_in, z_dst_in, w_cat, b_hid, w_out, b_out)

    return out_row[0, :N]                                  # == .view(-1)


def init_params(key, dim):
    """Deterministic PyTorch-Linear-like init: U(-1/sqrt(in), 1/sqrt(in))."""
    ks = jax.random.split(key, 6)
    bound = 1.0 / jnp.sqrt(dim)
    u = lambda k, s: jax.random.uniform(k, s, jnp.float32, -bound, bound)
    return {"w_src": u(ks[0], (dim, dim)), "b_src": u(ks[1], (dim,)),
            "w_dst": u(ks[2], (dim, dim)), "b_dst": u(ks[3], (dim,)),
            "w_out": u(ks[4], (1, dim)),   "b_out": u(ks[5], (1,))}


def _reference(z_src, z_dst, p):
    h = z_src @ p["w_src"].T + p["b_src"] + z_dst @ p["w_dst"].T + p["b_dst"]
    h = jnp.maximum(h, 0.0)
    return jax.nn.sigmoid(h @ p["w_out"].T + p["b_out"]).reshape(-1)


if __name__ == "__main__":
    key = jax.random.PRNGKey(0)
    k_p, k_src, k_dst = jax.random.split(key, 3)

    # Small shapes, deliberately NOT multiples of the tile sizes (exercises the
    # feature-dim padding and the partial last row block).
    N, dim = 200, 32
    params = init_params(k_p, dim)
    z_src = jax.random.normal(k_src, (N, dim), jnp.float32)
    z_dst = jax.random.normal(k_dst, (N, dim), jnp.float32)

    ref = _reference(z_src, z_dst, params)

    # Default (bf16 compute, f32 accumulate/epilogue).
    out = jax.block_until_ready(link_predictor(z_src, z_dst, params))
    assert out.shape == (N,)
    assert jnp.max(jnp.abs(out - ref)) < 2e-2, "bf16 kernel diverged from f32 reference"

    # f32 compute path as a numerics cross-check.
    out_f32 = jax.block_until_ready(
        link_predictor(z_src, z_dst, params, compute_dtype=jnp.float32))
    assert jnp.max(jnp.abs(out_f32 - ref)) < 2e-2

    print("KERNEL_OK")
</pallas_src>

<mosaic_0001>
module attributes {stable_mosaic.version = 11 : i64} {
  func.func @_link_predictor_kernel(%arg0: i32, %arg1: memref<128x128xf32, #tpu.memory_space<vmem>>, %arg2: memref<128x128xf32, #tpu.memory_space<vmem>>, %arg3: memref<256x128xbf16, #tpu.memory_space<vmem>>, %arg4: memref<1x128xf32, #tpu.memory_space<vmem>>, %arg5: memref<8x128xf32, #tpu.memory_space<vmem>>, %arg6: memref<1x1xf32, #tpu.memory_space<vmem>>, %arg7: memref<1x128xf32, #tpu.memory_space<vmem>>) attributes {dimension_semantics = [#tpu.dimension_semantics<parallel>], iteration_bounds = array<i64: 2>, scalar_prefetch = 0 : i64, scratch_operands = 0 : i64, tpu.core_type = #tpu.core_type<tc>, window_params = [{transform_indices = @transform_0, window_bounds = array<i64: 128, 128>}, {transform_indices = @transform_1, window_bounds = array<i64: 128, 128>}, {pipeline_mode = #tpu.pipeline_mode<synchronous>, transform_indices = @transform_2, window_bounds = array<i64: 256, 128>}, {pipeline_mode = #tpu.pipeline_mode<synchronous>, transform_indices = @transform_3, window_bounds = array<i64: 1, 128>}, {pipeline_mode = #tpu.pipeline_mode<synchronous>, transform_indices = @transform_4, window_bounds = array<i64: 8, 128>}, {pipeline_mode = #tpu.pipeline_mode<synchronous>, transform_indices = @transform_5, window_bounds = array<i64: 1, 1>}, {transform_indices = @transform_6, window_bounds = array<i64: 1, 128>}]} {
    %c0 = arith.constant 0 : index
    %c0_0 = arith.constant 0 : index
    %0 = vector.load %arg1[%c0, %c0_0] : memref<128x128xf32, #tpu.memory_space<vmem>>, vector<128x128xf32>
    %1 = arith.truncf %0 : vector<128x128xf32> to vector<128x128xbf16>
    %c0_1 = arith.constant 0 : index
    %c0_2 = arith.constant 0 : index
    %2 = vector.load %arg2[%c0_1, %c0_2] : memref<128x128xf32, #tpu.memory_space<vmem>>, vector<128x128xf32>
    %3 = arith.truncf %2 : vector<128x128xf32> to vector<128x128xbf16>
    %4 = tpu.concatenate %1, %3 in 1 : vector<128x128xbf16>, vector<128x128xbf16> -> vector<128x256xbf16>
    %c0_3 = arith.constant 0 : index
    %c0_4 = arith.constant 0 : index
    %5 = vector.load %arg3[%c0_3, %c0_4] : memref<256x128xbf16, #tpu.memory_space<vmem>>, vector<256x128xbf16>
    %cst = arith.constant dense<0.000000e+00> : vector<128x128xf32>
    %6 = tpu.matmul %4, %5, %cst {dimension_numbers = #tpu.dot_dimension_numbers<[1], [0], [0], [1], [0, 0, 1, 1], [], []>} : vector<128x256xbf16>, vector<256x128xbf16>, vector<128x128xf32> -> vector<128x128xf32>
    %c0_5 = arith.constant 0 : index
    %c0_6 = arith.constant 0 : index
    %7 = vector.load %arg4[%c0_5, %c0_6] : memref<1x128xf32, #tpu.memory_space<vmem>>, vector<1x128xf32>
    %8 = vector.broadcast %7 : vector<1x128xf32> to vector<128x128xf32>
    %9 = arith.addf %6, %8 : vector<128x128xf32>
    %cst_7 = arith.constant 0.000000e+00 : f32
    %10 = vector.broadcast %cst_7 : f32 to vector<128x128xf32>
    %11 = arith.maximumf %9, %10 : vector<128x128xf32>
    %c0_8 = arith.constant 0 : index
    %c0_9 = arith.constant 0 : index
    %12 = vector.load %arg5[%c0_8, %c0_9] : memref<8x128xf32, #tpu.memory_space<vmem>>, vector<8x128xf32>
    %cst_10 = arith.constant dense<0.000000e+00> : vector<8x128xf32>
    %13 = tpu.matmul %12, %11, %cst_10 {dimension_numbers = #tpu.dot_dimension_numbers<[1], [1], [0], [0], [0, 0, 1, 0], [], []>} : vector<8x128xf32>, vector<128x128xf32>, vector<8x128xf32> -> vector<8x128xf32>
    %14 = vector.extract_strided_slice %13 {offsets = [0, 0], sizes = [1, 128], strides = [1, 1]} : vector<8x128xf32> to vector<1x128xf32>
    %c0_11 = arith.constant 0 : index
    %c0_12 = arith.constant 0 : index
    %15 = vector.load %arg6[%c0_11, %c0_12] : memref<1x1xf32, #tpu.memory_space<vmem>>, vector<1x1xf32>
    %16 = vector.broadcast %15 : vector<1x1xf32> to vector<1x128xf32>
    %17 = arith.addf %14, %16 : vector<1x128xf32>
    %18 = arith.negf %17 : vector<1x128xf32>
    %19 = math.exp %18 : vector<1x128xf32>
    %cst_13 = arith.constant 1.000000e+00 : f32
    %20 = vector.broadcast %cst_13 : f32 to vector<1x128xf32>
    %21 = arith.addf %20, %19 : vector<1x128xf32>
    %22 = arith.divf %20, %21 : vector<1x128xf32>
    %c0_14 = arith.constant 0 : index
    %c0_15 = arith.constant 0 : index
    %23 = vector.load %arg7[%c0_14, %c0_15] : memref<1x128xf32, #tpu.memory_space<vmem>>, vector<1x128xf32>
    tpu.vector_store %arg7[%c0_14, %c0_15], %22 {strides = array<i32>} : memref<1x128xf32, #tpu.memory_space<vmem>>, vector<1x128xf32>,
    return
  }
  func.func @transform_0(%arg0: i32) -> (i32, i32) {
    %c0_i32 = arith.constant 0 : i32
    %c0_i32_0 = arith.constant 0 : i32
    return %arg0, %c0_i32 : i32, i32
  }
  func.func @transform_1(%arg0: i32) -> (i32, i32) {
    %c0_i32 = arith.constant 0 : i32
    %c0_i32_0 = arith.constant 0 : i32
    return %arg0, %c0_i32 : i32, i32
  }
  func.func @transform_2(%arg0: i32) -> (i32, i32) {
    %c0_i32 = arith.constant 0 : i32
    %c0_i32_0 = arith.constant 0 : i32
    %c0_i32_1 = arith.constant 0 : i32
    return %c0_i32, %c0_i32_0 : i32, i32
  }
  func.func @transform_3(%arg0: i32) -> (i32, i32) {
    %c0_i32 = arith.constant 0 : i32
    %c0_i32_0 = arith.constant 0 : i32
    %c0_i32_1 = arith.constant 0 : i32
    return %c0_i32, %c0_i32_0 : i32, i32
  }
  func.func @transform_4(%arg0: i32) -> (i32, i32) {
    %c0_i32 = arith.constant 0 : i32
    %c0_i32_0 = arith.constant 0 : i32
    %c0_i32_1 = arith.constant 0 : i32
    return %c0_i32, %c0_i32_0 : i32, i32
  }
  func.func @transform_5(%arg0: i32) -> (i32, i32) {
    %c0_i32 = arith.constant 0 : i32
    %c0_i32_0 = arith.constant 0 : i32
    %c0_i32_1 = arith.constant 0 : i32
    return %c0_i32, %c0_i32_0 : i32, i32
  }
  func.func @transform_6(%arg0: i32) -> (i32, i32) {
    %c0_i32 = arith.constant 0 : i32
    %c0_i32_0 = arith.constant 0 : i32
    return %c0_i32, %arg0 : i32, i32
  }
}

</mosaic_0001>

<bundles_post_ra>
// kernel: tpu_custom_call.1
= control target key start
LH: loop header
LB: loop body
LE: loop exit
PB: predicated region body
PF: predicated region fallthrough
CT: control target
= control target key end

     0   :  { %s1641_s0 = inlined_call_operand.hbm [shape: f32[200,128], index: 0, kind: input, shape index: {}]   ;;  %s1642_s1 = inlined_call_operand.hbm [shape: f32[200,128], index: 1, kind: input, shape index: {}]   ;;  %s1643_s2 = inlined_call_operand.hbm [shape: bf16[256,128], index: 2, kind: input, shape index: {}]   ;;  %s1644_s3 = inlined_call_operand.vmem [shape: f32[1,128], index: 3, kind: input, shape index: {}]   ;;  %s1645_s4 = inlined_call_operand.vmem [shape: f32[8,128], index: 4, kind: input, shape index: {}]   ;;  %s1646_s5 = inlined_call_operand.<no memory space> [shape: f32[1,1], index: 5, kind: input, shape index: {}]   ;;  %s1647_s6 = inlined_call_operand.hbm [shape: f32[1,256], index: 6, kind: output, shape index: {}]  }
   0x1   :  { %1652 = sst [smem:[#allocation14_spill]] %s1641_s0  ;;  %v11_v0 = vstv %s1646_s5 }
   0x2   :  { %12 = vst [vmem:[#allocation2] sm:$0x1] %v11_v0 }
   0x3   :  { %13 = vsyncpa [#allocation4], 0 }
   0x4   :  { %15 = vsyncpa [#allocation4 + $0x1], 0 }
   0x5   :  { %16 = vsyncpa [#allocation7], 0 }
   0x6   :  { %18 = vsyncpa [#allocation7 + $0x1], 0 }
   0x7   :  { %19 = vsyncpa [#allocation5], 0 }
   0x8   :  { %21 = vsyncpa [#allocation5 + $0x1], 0  ;;  %s1324_s23 = smov 0   ;;  %s1326_s24 = smov 0  }
   0x9   :  { %s1328_s25 = smov 0   ;;  %s1330_s26 = smov 0  }
   0xa LB: > { %s1345_s5 = sadd.s32 4294967295, %s1270_s26   ;;  %s844_s27 = sadd.s32 4294967294, %s1270_s26   ;;  %s1270_s26 = sphi %s1330_s26, %s1671_s26   ;;  %s1266_s25 = sphi %s1328_s25, %s1670_s25   ;;  %s1262_s24 = sphi %s1326_s24, %s1669_s24   ;;  %s1258_s23 = sphi %s1324_s23, %s1668_s23  }
   0xb   : > { %s1349_s28 = sadd.s32 1, %s1270_s26   ;;  %s34_s29 = sadd.s32 1, %s1266_s25 }
   0xc   : > { %s31_s30 = ssub.s32 %s1270_s26, %s1349_s28  ;;  %p41_p0 = scmp.ne.s32.totalorder %s1266_s25, %s1262_s24 }
   0xd   : > { %p32_p1 = scmp.eq.s32.totalorder %s31_s30, 0  ;;  %p42_p2 = scmp.eq.s32.totalorder %s1270_s26, 0 }
   0xe   : > { %p47_p3 = scmp.ne.s32.totalorder %s1262_s24, %s1258_s23  ;;  %p1648_p4 = scmp.eq.s32.totalorder %s1345_s5, 0 }
   0xf   : > { %s1361_s7 = scalar_select %p32_p1, %s1266_s25, %s34_s29  }
  0x10   : > { %p1363_p5 = por %p42_p2, %p41_p0  ;;  %p1369_p6 = por %p1648_p4, %p47_p3 }
  0x11   : > { %p181_p7 = scmp.eq.s32.totalorder %s1345_s5, 1  ;;  %p187_p8 = scmp.eq.s32.totalorder %s844_s27, 1 }
  0x12   : > { %s1653_s8 = scalar_select %p1363_p5, 1, 0 }
  0x13   : > { %s1654_s9 = scalar_select %p1369_p6, 1, 0 }
  0x14   : > { %p845_p9 = scmp.ge.s32.totalorder %s1270_s26, 1  ;;  %p194_p10 = scmp.lt.s32.totalorder %s1270_s26, 3 }
  0x15   : > { %p1376_p11 = por %p181_p7, %p41_p0  ;;  %p1380_p12 = por %p187_p8, %p47_p3 }
  0x16   : > { %p1384_p13 = pnand %p845_p9, %p194_p10  ;;  %s1272_s13 = smov [#allocation8]  }
  0x17   : > { %s1655_s10 = scalar_select %p1376_p11, 1, 0 }
  0x18   : > { %s1656_s11 = scalar_select %p1380_p12, 1, 0 }
  0x19   : > { %s1657_s12 = scalar_select %p1384_p13, 1, 0 }
  0x1a   : > { %p1037_p1 = pneg %p1384_p13  ;;  %s206_s14 = sshll.u32 %s1272_s13, 4  ;;  %s207_s14 = int_to_ptr.vmem [resolvable:$true] %s206_s14 }
  0x1b   : > { %s1112_s18 = scalar_lea.hbm %s1643_s2, 2048 }
  0x1c   : > { %p1392_p2 = pnand %p1037_p1, %p1648_p4  ;;  %p1113_p0 = scmp.ne.s32.totalorder %s1643_s2, %s1112_s18 }
  0x1d   : > { %p1119_p9 = scmp.lt.u32.totalorder %s1112_s18, %s1643_s2 }
  0x1e   : > { %p1114_p3 = pneg %p1392_p2 }
  0x20   : > { %p1115_p7 = pnand %p1114_p3, %p1113_p0 }
  0x22   : > { %p1116_p8 = pneg %p1115_p7 }
  0x24   : > { %p1121_p10 = pnand %p1119_p9, %p1116_p8 }
  0x26   : > { %1124 = shalt.err (!%p1121_p10)
}
  0x27   : > { %s1125_s27 = scalar_lea.vmem %s207_s14, 2048  ;;  %p1133_p11 = scmp.lt.s32.totalorder %s207_s14, %s207_s14 }
  0x28   : > { %p1126_p1 = scmp.ne.s32.totalorder %s207_s14, %s1125_s27  ;;  %p1134_p6 = scmp.lt.s32.totalorder %s1125_s27, %s1125_s27 }
  0x2a   : > { %p1128_p4 = pnand %p1126_p1, %p1114_p3  ;;  %p1135_p13 = por %p1134_p6, %p1133_p11 }
  0x2c   : > { %p1129_p12 = pneg %p1128_p4 }
  0x2e   : > { %p1136_p5 = pnand %p1135_p13, %p1129_p12 }
  0x30   : > { %1139 = shalt.err (!%p1136_p5)
}
  0x31   : > { %s1273_s29 = smov 64   ;;  %s1274_s30 = smov 4  }
  0x32   : > { %1040 = dma.hbm_to_vmem [thread:$0]  (!%p1392_p2), %s1643_s2, 2048, %s207_s14, [#allocation7], %s1273_s29, %s1273_s29, %s1274_s30  }
  0x33   : > { %p847_p0 = scmp.ge.s32.totalorder %s1270_s26, 2 }
  0x34   : > { %p1659_p4 = scmp.ne.s32.totalorder (!%p847_p0), %s1653_s8, 0 }
  0x35   : > { %225 = sbr.rel (%p847_p0) target bundleno = 137 (0x89), region = 32 }
  0x3c   : > { %228 = sbr.rel (!%p1659_p4) target bundleno = 100 (0x64), region = 36  ;;  %s229_s17 = sand.u32 (%p1659_p4), 1, %s1266_s25  }
  0x3d   : > { %s849_s18 = sshll.u32 (%p1659_p4), %s1270_s26, 4  ;;  %s848_s19 = sshll.u32 (%p1659_p4), %s229_s17, 7 }
  0x3e   : > { %s235_s20 = ssub.s32 (%p1659_p4), 25, %s849_s18  ;;  %s1422_s21 = scalar_lea.sflag (%p1659_p4), [#allocation4], %s229_s17 }
  0x3f   : > { %p236_p5 = scmp.lt.s32.totalorder (%p1659_p4), %s235_s20, 16  ;;  %s233_s22 = scalar_lea.vmem (%p1659_p4), [#allocation3], %s848_s19 }
  0x43   : > { %s1673_s20 = smov (!%p236_p5, %s235_s20), 16 }
  0x44   : > { %s1419_s15 = sshll.u32 %s1673_s20, 7 }
  0x45   : > { %s240_s14 = ssub.s32 2048, %s1419_s15 }
  0x46   : > { %241 = vsyncadd %s1422_s21, %s240_s14  ;;  %p851_p6 = scmp.ne.s32.totalorder %s1419_s15, 0  ;;  %s887_s27 = sshll.u32 %s1270_s26, 11 }
  0x47   : > { %s1660_s0 = sld [smem:[#allocation14_spill]]  ;;  %s246_s16 = sshll.u32 %s233_s22, 4  ;;  %s1432_s16 = int_to_ptr.vmem [resolvable:$true] %s246_s16 }
  0x4d   : > { %s1430_s13 = scalar_lea.hbm %s1660_s0, %s887_s27  ;;  %s1144_s20 = scalar_lea.hbm %s1660_s0, 3200 }
  0x4e   : > { %s1140_s17 = scalar_lea.hbm %s1430_s13, %s1419_s15  ;;  %p1145_p2 = scmp.lt.u32.totalorder %s1430_s13, %s1660_s0 }
  0x4f   : > { %p1141_p11 = scmp.ne.s32.totalorder %s1430_s13, %s1140_s17  ;;  %p1146_p3 = scmp.lt.u32.totalorder %s1144_s20, %s1140_s17 }
  0x50   : > { %p1148_p8 = scmp.lt.u32.totalorder %s1140_s17, %s1430_s13 }
  0x51   : > { %p1142_p12 = pnand %p1141_p11, %p851_p6  ;;  %p1147_p7 = por %p1146_p3, %p1145_p2 }
  0x53   : > { %p1143_p13 = pneg %p1142_p12  ;;  %p1149_p9 = por %p1148_p8, %p1147_p7 }
  0x55   : > { %p1150_p10 = pnand %p1149_p9, %p1143_p13 }
  0x57   : > { %1153 = shalt.err (!%p1150_p10)
}
  0x58   : > { %s1154_s22 = scalar_lea.vmem %s1432_s16, %s1419_s15  ;;  %s1275_s27 = smov [#allocation3]  }
  0x59   : > { %p1155_p1 = scmp.ne.s32.totalorder %s1432_s16, %s1154_s22  ;;  %s1158_s30 = sshll.u32 %s1275_s27, 4  ;;  %s1159_s30 = int_to_ptr.vmem [resolvable:$false] %s1158_s30 }
  0x5a   : > { %s1160_s18 = scalar_lea.vmem %s1159_s30, 4096  ;;  %p1161_p11 = scmp.lt.s32.totalorder %s1432_s16, %s1159_s30 }
  0x5b   : > { %p1156_p4 = pnand %p1155_p1, %p851_p6  ;;  %p1162_p12 = scmp.lt.s32.totalorder %s1160_s18, %s1154_s22 }
  0x5d   : > { %p1157_p5 = pneg %p1156_p4  ;;  %p1163_p2 = por %p1162_p12, %p1161_p11 }
  0x5f   : > { %p1164_p3 = pnand %p1163_p2, %p1157_p5 }
  0x61   : > { %1167 = shalt.err (!%p1164_p3)
}
  0x62   : > { %s1276_s17 = smov 128   ;;  %s1277_s19 = smov 8  }
  0x63   : > { %252 = dma.hbm_to_vmem [thread:$0]  (%p851_p6), %s1430_s13, %s1419_s15, %s1432_s16, %s1422_s21, %s1276_s17, %s1276_s17, %s1277_s19  }
  0x64 PF: > { %p1661_p13 = scmp.ne.s32.totalorder %s1653_s8, 0 }
  0x65   : > { %s256_s20 = sand.u32 (%p1661_p13), 1, %s1270_s26   ;;  %s258_s14 = sand.u32 (%p1661_p13), 1, %s1266_s25  }
  0x66   : > { %255 = sbr.rel (!%p1661_p13) target bundleno = 137 (0x89), region = 40  ;;  %s855_s29 = sshll.u32 (%p1661_p13), %s258_s14, 7 }
  0x67   : > { %s856_s22 = sshll.u32 (%p1661_p13), %s1270_s26, 4  ;;  %s1467_s0 = scalar_lea.sflag (%p1661_p13), [#allocation7], %s256_s20 }
  0x68   : > { %s262_s27 = ssub.s32 (%p1661_p13), 25, %s856_s22  ;;  %s260_s15 = scalar_lea.vmem (%p1661_p13), [#allocation6], %s855_s29 }
  0x69   : > { %p263_p7 = scmp.lt.s32.totalorder (%p1661_p13), %s262_s27, 16 }
  0x6d   : > { %s1675_s27 = smov (!%p263_p7, %s262_s27), 16 }
  0x6e   : > { %s1464_s30 = sshll.u32 %s1675_s27, 7 }
  0x6f   : > { %s267_s18 = ssub.s32 2048, %s1464_s30 }
  0x70   : > { %268 = vsyncadd %s1467_s0, %s267_s18  ;;  %p858_p6 = scmp.ne.s32.totalorder %s1464_s30, 0  ;;  %s888_s8 = sshll.u32 %s1270_s26, 11 }
  0x71   : > { %s1475_s16 = scalar_lea.hbm %s1642_s1, %s888_s8  ;;  %s273_s17 = sshll.u32 %s260_s15, 4  ;;  %s1477_s17 = int_to_ptr.vmem [resolvable:$true] %s273_s17 }
  0x72   : > { %s1168_s19 = scalar_lea.hbm %s1475_s16, %s1464_s30  ;;  %s1172_s29 = scalar_lea.hbm %s1642_s1, 3200 }
  0x73   : > { %p1169_p8 = scmp.ne.s32.totalorder %s1475_s16, %s1168_s19  ;;  %p1173_p1 = scmp.lt.u32.totalorder %s1475_s16, %s1642_s1 }
  0x74   : > { %p1174_p4 = scmp.lt.u32.totalorder %s1172_s29, %s1168_s19  ;;  %p1176_p11 = scmp.lt.u32.totalorder %s1168_s19, %s1475_s16 }
  0x75   : > { %p1170_p9 = pnand %p1169_p8, %p858_p6 }
  0x76   : > { %p1175_p5 = por %p1174_p4, %p1173_p1 }
  0x77   : > { %p1171_p10 = pneg %p1170_p9 }
  0x78   : > { %p1177_p12 = por %p1176_p11, %p1175_p5 }
  0x7a   : > { %p1178_p2 = pnand %p1177_p12, %p1171_p10 }
  0x7c   : > { %1181 = shalt.err (!%p1178_p2)
}
  0x7d   : > { %s1182_s18 = scalar_lea.vmem %s1477_s17, %s1464_s30  ;;  %s1278_s15 = smov [#allocation6]  }
  0x7e   : > { %p1183_p3 = scmp.ne.s32.totalorder %s1477_s17, %s1182_s18  ;;  %s1186_s8 = sshll.u32 %s1278_s15, 4  ;;  %s1187_s8 = int_to_ptr.vmem [resolvable:$false] %s1186_s8 }
  0x7f   : > { %s1188_s21 = scalar_lea.vmem %s1187_s8, 4096  ;;  %p1189_p8 = scmp.lt.s32.totalorder %s1477_s17, %s1187_s8 }
  0x80   : > { %p1184_p13 = pnand %p1183_p3, %p858_p6  ;;  %p1190_p9 = scmp.lt.s32.totalorder %s1188_s21, %s1182_s18 }
  0x82   : > { %p1185_p7 = pneg %p1184_p13  ;;  %p1191_p1 = por %p1190_p9, %p1189_p8 }
  0x84   : > { %p1192_p4 = pnand %p1191_p1, %p1185_p7 }
  0x86   : > { %1195 = shalt.err (!%p1192_p4)
}
  0x87   : > { %s1279_s13 = smov 128   ;;  %s1280_s19 = smov 8  }
  0x88   : > { %279 = dma.hbm_to_vmem [thread:$0]  (%p858_p6), %s1475_s16, %s1464_s30, %s1477_s17, %s1467_s0, %s1279_s13, %s1279_s13, %s1280_s19  }
  0x89 PF: > { %p1662_p10 = scmp.ne.s32.totalorder %s1657_s12, 0 }
  0x8a   : > { %s1507_s20 = sand.u32 (!%p1662_p10), 1, %s1262_s24   ;;  %p1663_p5 = scmp.ne.s32.totalorder (!%p1662_p10), %s1654_s9, 0 }
  0x8b   : > { %285 = sbr.rel (%p1662_p10) target bundleno = 726 (0x2d6), region = 44  ;;  %s863_s14 = sshll.u32 (!%p1662_p10), %s1507_s20, 7 }
  0x8c   : > { %s288_s29 = scalar_lea.sflag (!%p1662_p10), [#allocation4], %s1507_s20  ;;  %s1511_s22 = scalar_lea.vmem (!%p1662_p10), [#allocation3], %s863_s14 }
  0x92   : > { %1241 = dma.done.wait (%p1663_p5), %s288_s29, 2048  }
  0x93   : > { %1243 = vsyncadd (%p1663_p5), %s288_s29, 4294965248  ;;  %s296_s0 = sand.u32 1, %s1345_s5   ;;  %s1518_s30 = scalar_lea.vmem [#allocation6], %s863_s14 }
  0x94   : > { %s297_s12 = scalar_lea.sflag [#allocation7], %s296_s0 }
  0x95   : > { %1245 = dma.done.wait (%p1663_p5), %s297_s12, 2048  }
  0x96   : > { %1247 = vsyncadd (%p1663_p5), %s297_s12, 4294965248  ;;  %p1664_p6 = scmp.eq.s32.totalorder %s1345_s5, 0 }
  0x98   : > { %1249 = dma.done.wait (%p1664_p6), [#allocation7], 2048   ;;  %p1665_p11 = pmov %p1664_p6 }
  0x99   : > { %v1092_v1 = vld [vmem:[#allocation8 + $0x40] sm:$0xff]   ;;  %v1094_v3 = vld [vmem:[#allocation8 + $0x48] sm:$0xff]   ;;  %v1096_v5 = vld [vmem:[#allocation8 + $0x50] sm:$0xff]   ;;  %vm1282_vm0 = vmmov 0   ;;  %s884_s18 = sshll.u32 %s1345_s5, 4  ;;  %s336_s15 = scalar_lea.vmem [#allocation9], %s1507_s20 }
  0x9a   : > { %1251 = vsyncadd (%p1665_p11), [#allocation7], 4294965248  ;;  %v1093_v2 = vld [vmem:[#allocation8] sm:$0xff]   ;;  %889 = vmatprep.subr.bf16.mxu0 %v1092_v1  ;;  %v1095_v4 = vld [vmem:[#allocation8 + $0x8] sm:$0xff]   ;;  %v1281_v1 = vmov 0.0|0.0   ;;  %s746_s8 = sshll.u32 %s336_s15, 4  ;;  %s1597_s19 = scalar_lea.hbm %s1647_s6, %s884_s18  ;;  %s1599_s8 = int_to_ptr.vmem [resolvable:$true] %s746_s8 }
  0x9b   : > { %890 = vmatpush3.bf16.msra.mxu0 %v1093_v2  ;;  %v1097_v6 = vld [vmem:[#allocation8 + $0x10] sm:$0xff]   ;;  %v1098_v7 = vld [vmem:[#allocation8 + $0x58] sm:$0xff]   ;;  %v1100_v9 = vld [vmem:[#allocation8 + $0x60] sm:$0xff]   ;;  %1005 = vmatprep.subr.bf16.mxu1 %v1281_v1  ;;  %v1283_v2 = vmov 0.0   ;;  %s734_s14 = scalar_lea.sflag [#allocation5], %s1507_s20  ;;  %s1196_s29 = scalar_lea.vmem %s1599_s8, 16 }
  0x9c   : > { %891 = vmatprep.subr.bf16.mxu0 %v1094_v3  ;;  %v1099_v8 = vld [vmem:[#allocation8 + $0x18] sm:$0xff]   ;;  %v1101_v10 = vld [vmem:[#allocation8 + $0x20] sm:$0xff]   ;;  %v1102_v11 = vld [vmem:[#allocation8 + $0x68] sm:$0xff]   ;;  %1002 = vmatprep.mubr.msk.f32.mxu1 %vm1282_vm0, %v1283_v2  ;;  %p1197_p12 = scmp.ne.s32.totalorder %s1599_s8, %s1196_s29  ;;  %p1666_p2 = scmp.ne.s32.totalorder %s1655_s10, 0 }
  0x9d   : > { %v372_v12 = vld [vmem:[%s1518_s30] sm:$0xff]  ;;  %v373_v13 = vld [vmem:[%s1518_s30 + $0x8] sm:$0xff]  ;;  %v1104_v16 = vld [vmem:[#allocation8 + $0x70] sm:$0xff]   ;;  %s1285_s5 = smov [#allocation9]  }
  0x9e   : > { %v388_v14 = vpack.c.bf16 %v373_v13, %v372_v12  ;;  %v1103_v15 = vld [vmem:[#allocation8 + $0x28] sm:$0xff]   ;;  %v1105_v17 = vld [vmem:[#allocation8 + $0x30] sm:$0xff]   ;;  %v1106_v18 = vld [vmem:[#allocation8 + $0x78] sm:$0xff]   ;;  %p1198_p3 = pnand %p1197_p12, %p1666_p2 }
  0x9f   : > { %892 = vmatpush3.bf16.msra.mxu0 %v1095_v4  ;;  %v1107_v19 = vld [vmem:[#allocation8 + $0x38] sm:$0xff]   ;;  %v348_v20 = vld [vmem:[%s1511_s22] sm:$0xff]  ;;  %v349_v21 = vld [vmem:[%s1511_s22 + $0x8] sm:$0xff]  ;;  %v1284_v4 = vmov 0  }
  0xa0   : > { %893 = vmatprep.subr.bf16.mxu0 %v1096_v5  ;;  %563 = vmatprep.mubr.bf16.mxu0 %v388_v14  ;;  %v374_v22 = vld [vmem:[%s1518_s30 + $0x10] sm:$0xff]  ;;  %v375_v23 = vld [vmem:[%s1518_s30 + $0x18] sm:$0xff]  ;;  %v364_v24 = vpack.c.bf16 %v349_v21, %v348_v20  ;;  %v376_v28 = vld [vmem:[%s1518_s30 + $0x20] sm:$0xff]  ;;  %p1199_p13 = pneg %p1198_p3 }
  0xa1   : > { %v389_v25 = vpack.c.bf16 %v375_v23, %v374_v22  ;;  %v350_v26 = vld [vmem:[%s1511_s22 + $0x10] sm:$0xff]  ;;  %v351_v27 = vld [vmem:[%s1511_s22 + $0x18] sm:$0xff]  ;;  %v377_v29 = vld [vmem:[%s1518_s30 + $0x28] sm:$0xff]  ;;  %1091 = vset.pattern.permute.xlu0 %v1284_v4 }
  0xa2   : > { %v365_v30 = vpack.c.bf16 %v351_v27, %v350_v26  ;;  %v390_v31 = vpack.c.bf16 %v377_v29, %v376_v28  ;;  %v352_v32 = vld [vmem:[%s1511_s22 + $0x20] sm:$0xff]  ;;  %v353_v33 = vld [vmem:[%s1511_s22 + $0x28] sm:$0xff]  ;;  %v378_v34 = vld [vmem:[%s1518_s30 + $0x30] sm:$0xff] }
  0xa3   : > { %894 = vmatpush3.bf16.msra.mxu0 %v1097_v6  ;;  %v379_v35 = vld [vmem:[%s1518_s30 + $0x38] sm:$0xff]  ;;  %v366_v36 = vpack.c.bf16 %v353_v33, %v352_v32  ;;  %v354_v38 = vld [vmem:[%s1511_s22 + $0x30] sm:$0xff]  ;;  %v380_v40 = vld [vmem:[%s1518_s30 + $0x40] sm:$0xff] }
  0xa4   : > { %895 = vmatprep.subr.bf16.mxu0 %v1098_v7  ;;  %v391_v37 = vpack.c.bf16 %v379_v35, %v378_v34  ;;  %v355_v39 = vld [vmem:[%s1511_s22 + $0x38] sm:$0xff]  ;;  %v381_v41 = vld [vmem:[%s1518_s30 + $0x48] sm:$0xff]  ;;  %v356_v44 = vld [vmem:[%s1511_s22 + $0x40] sm:$0xff] }
  0xa5   : > { %v367_v42 = vpack.c.bf16 %v355_v39, %v354_v38  ;;  %v392_v43 = vpack.c.bf16 %v381_v41, %v380_v40  ;;  %v357_v45 = vld [vmem:[%s1511_s22 + $0x48] sm:$0xff]  ;;  %v382_v46 = vld [vmem:[%s1518_s30 + $0x50] sm:$0xff]  ;;  %v383_v47 = vld [vmem:[%s1518_s30 + $0x58] sm:$0xff] }
  0xa6   : > { %v368_v48 = vpack.c.bf16 %v357_v45, %v356_v44  ;;  %v393_v49 = vpack.c.bf16 %v383_v47, %v382_v46  ;;  %v358_v50 = vld [vmem:[%s1511_s22 + $0x50] sm:$0xff]  ;;  %v359_v51 = vld [vmem:[%s1511_s22 + $0x58] sm:$0xff]  ;;  %v384_v52 = vld [vmem:[%s1518_s30 + $0x60] sm:$0xff] }
  0xa7   : > { %896 = vmatpush3.bf16.msra.mxu0 %v1099_v8  ;;  %v385_v53 = vld [vmem:[%s1518_s30 + $0x68] sm:$0xff]  ;;  %v369_v54 = vpack.c.bf16 %v359_v51, %v358_v50  ;;  %v360_v56 = vld [vmem:[%s1511_s22 + $0x60] sm:$0xff]  ;;  %v386_v58 = vld [vmem:[%s1518_s30 + $0x70] sm:$0xff] }
  0xa8   : > { %897 = vmatprep.subr.bf16.mxu0 %v1100_v9  ;;  %v394_v55 = vpack.c.bf16 %v385_v53, %v384_v52  ;;  %v361_v57 = vld [vmem:[%s1511_s22 + $0x68] sm:$0xff]  ;;  %v387_v59 = vld [vmem:[%s1518_s30 + $0x78] sm:$0xff]  ;;  %v362_v62 = vld [vmem:[%s1511_s22 + $0x70] sm:$0xff] }
  0xa9   : > { %v370_v60 = vpack.c.bf16 %v361_v57, %v360_v56  ;;  %v395_v61 = vpack.c.bf16 %v387_v59, %v386_v58  ;;  %v363_v63 = vld [vmem:[%s1511_s22 + $0x78] sm:$0xff]  ;;  %s1200_s22 = sshll.u32 %s1285_s5, 4  ;;  %s1201_s22 = int_to_ptr.vmem [resolvable:$false] %s1200_s22 }
  0xaa   : > { %v371_v0 = vpack.c.bf16 %v363_v63, %v362_v62  ;;  %v715_v3 = vld [vmem:[#allocation2] sm:$0x1]  ;;  %s1202_s0 = scalar_lea.vmem %s1201_s22, 32  ;;  %p1203_p7 = scmp.lt.s32.totalorder %s1599_s8, %s1201_s22 }
  0xab   : > { %898 = vmatpush3.bf16.msra.mxu0 %v1101_v10  ;;  %718 = vperm.xlu0 %1091, %v715_v3   ;;  %v1564_v6 = vld [vmem:[%s1644_s3] ss:$0 sm:$0xff]  ;;  %p1204_p8 = scmp.lt.s32.totalorder %s1202_s0, %s1196_s29 }
  0xac   : > { %899 = vmatprep.subr.bf16.mxu0 %v1102_v11 }
  0xad   : > { %p1205_p9 = por %p1204_p8, %p1203_p7 }
  0xaf   : > { %900 = vmatpush3.bf16.msra.mxu0 %v1103_v15  ;;  %p1206_p1 = pnand %p1205_p9, %p1199_p13 }
  0xb0   : > { %901 = vmatprep.subr.bf16.mxu0 %v1104_v16 }
  0xb3   : > { %902 = vmatpush3.bf16.msra.mxu0 %v1105_v17 }
  0xb4   : > { %903 = vmatprep.subr.bf16.mxu0 %v1106_v18 }
  0xb7   : > { %904 = vmatpush3.bf16.msra.mxu0 %v1107_v19 }
  0xba   : > { %564 = vmatmul.mubr.bf16.vlgmr.msra.gmra.mrb[0].mxu0 %v364_v24 }
  0xbb   : > { %571 = vmatprep.mubr.bf16.mxu0 %v389_v25 }
  0xc2   : > { %572 = vmatmul.mubr.bf16.gmra.mrb[4].mxu0 %v365_v30 }
  0xc3   : > { %579 = vmatprep.mubr.bf16.mxu0 %v390_v31 }
  0xca   : > { %580 = vmatmul.mubr.bf16.gmra.mrb[8].mxu0 %v366_v36 }
  0xcb   : > { %587 = vmatprep.mubr.bf16.mxu0 %v391_v37 }
  0xd2   : > { %588 = vmatmul.mubr.bf16.gmra.mrb[12].mxu0 %v367_v42 }
  0xd3   : > { %595 = vmatprep.mubr.bf16.mxu0 %v392_v43 }
  0xda   : > { %596 = vmatmul.mubr.bf16.gmra.mrb[16].mxu0 %v368_v48 }
  0xdb   : > { %603 = vmatprep.mubr.bf16.mxu0 %v393_v49 }
  0xe2   : > { %604 = vmatmul.mubr.bf16.gmra.mrb[20].mxu0 %v369_v54 }
  0xe3   : > { %611 = vmatprep.mubr.bf16.mxu0 %v394_v55 }
  0xea   : > { %612 = vmatmul.mubr.bf16.gmra.mrb[24].mxu0 %v370_v60 }
  0xeb   : > { %619 = vmatprep.mubr.bf16.mxu0 %v395_v61 }
  0xf2   : > { %620 = vmatmul.mubr.bf16.gmra.mrb[28].mxu0 %v371_v0 }
 0x18d   : > { %v905_v5 = vpop.f32.mrb[0].mxu0 }
 0x18e   : > { %v906_v7 = vpop.f32.mrb[1].mxu0 }
 0x18f   : > { %v907_v8 = vadd.f32 %v906_v7, %v905_v5  ;;  %v908_v9 = vpop.f32.mrb[2].mxu0 }
 0x190   : > { %v909_v10 = vpop.f32.mrb[3].mxu0 }
 0x191   : > { %v566_v11 = vadd.f32 %v907_v8, %v1564_v6  ;;  %v910_v12 = vadd.f32 %v909_v10, %v908_v9 }
 0x193   : > { %v569_v13 = vadd.f32 %v910_v12, %v1564_v6  ;;  %v628_v14 = vmax.f32 %v566_v11, 0.0 }
 0x195   : > { %v629_v15 = vmax.f32 %v569_v13, 0.0  ;;  %v911_v16 = vpop.f32.mrb[4].mxu0 }
 0x196   : > { %v912_v17 = vpop.f32.mrb[5].mxu0 }
 0x197   : > { %v913_v18 = vadd.f32 %v912_v17, %v911_v16  ;;  %v914_v19 = vpop.f32.mrb[6].mxu0  ;;  %v1006_v20 = vpack.c.bf16 %v629_v15, %v628_v14 }
 0x198   : > { %v915_v21 = vpop.f32.mrb[7].mxu0 }
 0x199   : > { %v574_v22 = vadd.f32 %v913_v18, %v1564_v6  ;;  %v916_v23 = vadd.f32 %v915_v21, %v914_v19  ;;  %1007 = vmatpush3.bf16.xpose.msra.mxu1 %v1006_v20 }
 0x19a   : > { %1008 = vmatprep.subr.bf16.mxu1 %v1281_v1 }
 0x19b   : > { %v577_v24 = vadd.f32 %v916_v23, %v1564_v6  ;;  %v630_v25 = vmax.f32 %v574_v22, 0.0 }
 0x19d   : > { %v631_v26 = vmax.f32 %v577_v24, 0.0  ;;  %v917_v27 = vpop.f32.mrb[8].mxu0 }
 0x19e   : > { %v918_v28 = vpop.f32.mrb[9].mxu0 }
 0x19f   : > { %v919_v29 = vadd.f32 %v918_v28, %v917_v27  ;;  %v920_v30 = vpop.f32.mrb[10].mxu0  ;;  %v1009_v31 = vpack.c.bf16 %v631_v26, %v630_v25 }
 0x1a0   : > { %v921_v32 = vpop.f32.mrb[11].mxu0 }
 0x1a1   : > { %v582_v33 = vadd.f32 %v919_v29, %v1564_v6  ;;  %v922_v34 = vadd.f32 %v921_v32, %v920_v30  ;;  %1010 = vmatpush3.bf16.xpose.msra.mxu1 %v1009_v31  ;;  %v644_v32 = vld [vmem:[%s1645_s4] sm:$0xff] }
 0x1a2   : > { %1011 = vmatprep.subr.bf16.mxu1 %v1281_v1 }
 0x1a3   : > { %v585_v35 = vadd.f32 %v922_v34, %v1564_v6  ;;  %v632_v36 = vmax.f32 %v582_v33, 0.0  ;;  %v721_v33 = vlaneseq }
 0x1a5   : > { %v633_v37 = vmax.f32 %v585_v35, 0.0  ;;  %v923_v38 = vpop.f32.mrb[12].mxu0  ;;  %v722_v34 = vshrl.u32 %v721_v33, 7 }
 0x1a6   : > { %v924_v39 = vpop.f32.mrb[13].mxu0 }
 0x1a7   : > { %v925_v40 = vadd.f32 %v924_v39, %v923_v38  ;;  %v926_v41 = vpop.f32.mrb[14].mxu0  ;;  %v1012_v42 = vpack.c.bf16 %v633_v37, %v632_v36  ;;  %v723_v35 = vsub.s32 0, %v722_v34  ;;  %v719_v36 = vpop.permute.xlu0 %718 }
 0x1a8   : > { %v927_v43 = vpop.f32.mrb[15].mxu0 }
 0x1a9   : > { %v590_v44 = vadd.f32 %v925_v40, %v1564_v6  ;;  %v928_v45 = vadd.f32 %v927_v43, %v926_v41  ;;  %1013 = vmatpush3.bf16.xpose.msra.mxu1 %v1012_v42  ;;  %v724_v37 = vrot.slane %v719_v36, %v723_v35 }
 0x1aa   : > { %1014 = vmatprep.subr.bf16.mxu1 %v1281_v1 }
 0x1ab   : > { %v593_v46 = vadd.f32 %v928_v45, %v1564_v6  ;;  %v634_v47 = vmax.f32 %v590_v44, 0.0 }
 0x1ad   : > { %v635_v48 = vmax.f32 %v593_v46, 0.0  ;;  %v929_v49 = vpop.f32.mrb[16].mxu0 }
 0x1ae   : > { %v930_v50 = vpop.f32.mrb[17].mxu0 }
 0x1af   : > { %v931_v51 = vadd.f32 %v930_v50, %v929_v49  ;;  %v932_v52 = vpop.f32.mrb[18].mxu0  ;;  %v1015_v53 = vpack.c.bf16 %v635_v48, %v634_v47 }
 0x1b0   : > { %v933_v54 = vpop.f32.mrb[19].mxu0 }
 0x1b1   : > { %v598_v55 = vadd.f32 %v931_v51, %v1564_v6  ;;  %v934_v56 = vadd.f32 %v933_v54, %v932_v52  ;;  %1016 = vmatpush3.bf16.xpose.msra.mxu1 %v1015_v53 }
 0x1b2   : > { %1017 = vmatprep.subr.bf16.mxu1 %v1281_v1 }
 0x1b3   : > { %v601_v57 = vadd.f32 %v934_v56, %v1564_v6  ;;  %v636_v58 = vmax.f32 %v598_v55, 0.0 }
 0x1b5   : > { %v637_v59 = vmax.f32 %v601_v57, 0.0  ;;  %v935_v60 = vpop.f32.mrb[20].mxu0 }
 0x1b6   : > { %v936_v61 = vpop.f32.mrb[21].mxu0 }
 0x1b7   : > { %v937_v62 = vadd.f32 %v936_v61, %v935_v60  ;;  %v938_v63 = vpop.f32.mrb[22].mxu0  ;;  %v1018_v0 = vpack.c.bf16 %v637_v59, %v636_v58 }
 0x1b8   : > { %v939_v2 = vpop.f32.mrb[23].mxu0 }
 0x1b9   : > { %v606_v3 = vadd.f32 %v937_v62, %v1564_v6  ;;  %v940_v4 = vadd.f32 %v939_v2, %v938_v63  ;;  %1019 = vmatpush3.bf16.xpose.msra.mxu1 %v1018_v0 }
 0x1ba   : > { %1020 = vmatprep.subr.bf16.mxu1 %v1281_v1 }
 0x1bb   : > { %v609_v5 = vadd.f32 %v940_v4, %v1564_v6  ;;  %v638_v7 = vmax.f32 %v606_v3, 0.0 }
 0x1bd   : > { %v639_v8 = vmax.f32 %v609_v5, 0.0  ;;  %v941_v9 = vpop.f32.mrb[24].mxu0 }
 0x1be   : > { %v942_v10 = vpop.f32.mrb[25].mxu0 }
 0x1bf   : > { %v943_v11 = vadd.f32 %v942_v10, %v941_v9  ;;  %v944_v12 = vpop.f32.mrb[26].mxu0  ;;  %v1021_v13 = vpack.c.bf16 %v639_v8, %v638_v7 }
 0x1c0   : > { %v945_v14 = vpop.f32.mrb[27].mxu0 }
 0x1c1   : > { %v614_v15 = vadd.f32 %v943_v11, %v1564_v6  ;;  %v946_v16 = vadd.f32 %v945_v14, %v944_v12  ;;  %1022 = vmatpush3.bf16.xpose.msra.mxu1 %v1021_v13 }
 0x1c2   : > { %1023 = vmatprep.subr.bf16.mxu1 %v1281_v1 }
 0x1c3   : > { %v617_v17 = vadd.f32 %v946_v16, %v1564_v6  ;;  %v640_v18 = vmax.f32 %v614_v15, 0.0 }
 0x1c5   : > { %v641_v19 = vmax.f32 %v617_v17, 0.0  ;;  %v947_v20 = vpop.f32.mrb[28].mxu0 }
 0x1c6   : > { %v948_v21 = vpop.f32.mrb[29].mxu0 }
 0x1c7   : > { %v949_v22 = vadd.f32 %v948_v21, %v947_v20  ;;  %v950_v23 = vpop.f32.mrb[30].mxu0  ;;  %v1024_v24 = vpack.c.bf16 %v641_v19, %v640_v18 }
 0x1c8   : > { %v951_v25 = vpop.f32.mrb[31].mxu0 }
 0x1c9   : > { %v622_v26 = vadd.f32 %v949_v22, %v1564_v6  ;;  %v952_v27 = vadd.f32 %v951_v25, %v950_v23  ;;  %1025 = vmatpush3.bf16.xpose.msra.mxu1 %v1024_v24 }
 0x1ca   : > { %1026 = vmatprep.subr.bf16.mxu1 %v1281_v1 }
 0x1cb   : > { %v625_v28 = vadd.f32 %v952_v27, %v1564_v6  ;;  %v642_v29 = vmax.f32 %v622_v26, 0.0 }
 0x1cd   : > { %v643_v30 = vmax.f32 %v625_v28, 0.0 }
 0x1cf   : > { %v1027_v31 = vpack.c.bf16 %v643_v30, %v642_v29 }
 0x1d1   : > { %1028 = vmatpush3.bf16.xpose.msra.mxu1 %v1027_v31 }
 0x1d8   : > { %1003 = vmatmul.mubr.f32.vlgmr.msra.gmra.mrb[0].mxu1 %v644_v32 }
 0x2ab   : > { %v711_v1 = vpop.f32.mrb[0].mxu1 }
 0x2ac   : > { %v725_v38 = vadd.f32 %v724_v37, %v711_v1  ;;  %v1004_v6 = vpop.f32.mrb[1].mxu1 }
 0x2ae   : > { %v883_v39 = vmul.f32 -1.442695, %v725_v38 }
 0x2b0   : > { %1108 = vpow2.f32 %v883_v39 }
 0x2ba   : > { %v1109_v40 = vpop.eup %1108 }
 0x2bb   : > { %v729_v41 = vadd.f32 1.0, %v1109_v40 }
 0x2bd   : > { %1110 = vrcp.f32 %v729_v41 }
 0x2c7   : > { %v1111_v42 = vpop.eup %1110 }
 0x2c8   : > { %732 = vst [vmem:[%s336_s15] sm:$0x1] %v1111_v42 }
 0x2c9   : > { %1209 = shalt.err (!%p1206_p1)
}
 0x2ca   : > { %s1210_s20 = scalar_lea.hbm %s1597_s19, 16  ;;  %s1214_s9 = scalar_lea.hbm %s1647_s6, 32 }
 0x2cb   : > { %p1211_p4 = scmp.ne.s32.totalorder %s1597_s19, %s1210_s20  ;;  %p1215_p6 = scmp.lt.u32.totalorder %s1597_s19, %s1647_s6 }
 0x2cc   : > { %p1216_p11 = scmp.lt.u32.totalorder %s1214_s9, %s1210_s20  ;;  %p1218_p3 = scmp.lt.u32.totalorder %s1210_s20, %s1597_s19 }
 0x2cd   : > { %p1212_p10 = pnand %p1211_p4, %p1666_p2 }
 0x2ce   : > { %p1217_p12 = por %p1216_p11, %p1215_p6 }
 0x2cf   : > { %p1213_p5 = pneg %p1212_p10 }
 0x2d0   : > { %p1219_p13 = por %p1218_p3, %p1217_p12 }
 0x2d2   : > { %p1220_p7 = pnand %p1219_p13, %p1213_p5 }
 0x2d4   : > { %1223 = shalt.err (!%p1220_p7)
}
 0x2d5   : > { %1035 = dma.vmem_to_hbm [thread:$0]  (%p1666_p2), %s1599_s8, 16, %s1597_s19, %s734_s14  }
 0x2d6 PF: > { %s758_s27 = sand.u32 1, %s1258_s23   ;;  %p1667_p8 = scmp.ne.s32.totalorder %s1656_s11, 0 }
 0x2d7   : > { %s759_s18 = scalar_lea.sflag [#allocation5], %s758_s27 }
 0x2d8   : > { %p1042_p9 = pnand %p847_p0, %p1667_p8 }
 0x2da   : > { %1253 = dma.done.wait (!%p1042_p9), %s759_s18, 16  }
 0x2db   : > { %1255 = vsyncadd (!%p1042_p9), %s759_s18, 4294967280  ;;  %p24_p1 = scmp.ge.s32.totalorder %s1349_s28, 4   ;;  %s1668_s23 = smov %s1262_s24 }
 0x2dc   : > { %s1669_s24 = smov %s1266_s25  ;;  %s1670_s25 = smov %s1361_s7 }
 0x2dd   : > { %s1671_s26 = smov %s1349_s28  ;;  %26 = sbr.rel (!%p24_p1) target bundleno = 10 (0xa), region = 106 }
 0x2e4   :  { %763 = vsyncpa [#allocation4], 1 }
 0x2e5   :  { %765 = vsyncpa [#allocation4 + $0x1], 1 }
 0x2e6   :  { %766 = vsyncpa [#allocation7], 1 }
 0x2e7   :  { %768 = vsyncpa [#allocation7 + $0x1], 1 }
 0x2e8   :  { %769 = vsyncpa [#allocation5], 1 }
 0x2e9   :  { %771 = vsyncpa [#allocation5 + $0x1], 1 }

</bundles_post_ra>
